<compile_context>
chip_gen: v6e
topology: v6e:2x2x1
jax: 0.10.0
libtpu: 0.0.40
codegen_flags: <defaults>
</compile_context>

<pallas_src>
import jax
import jax.numpy as jnp
from jax.experimental import pallas as pl
from jax.experimental.pallas import tpu as pltpu

LANE = 128
F32_EPS = float(jnp.finfo(jnp.float32).eps)   # == torch.finfo(torch.float32).eps

_TARGET_BLOCK_ELEMS = 1 << 20                 # ~4 MiB f32 per block
_VMEM_LIMIT_BYTES = 32 * 1024 * 1024          # explicit: safe on v5e/v6e/v7x
_TINY_INPUT_ELEMS = 512                       # raise to ~64K-256K in production

# Dtypes streamed natively into the kernel (cast to f32 in-kernel). Anything
# else (f64/i64/bool/...) is cast to f32 in the wrapper first.
_NATIVE_DTYPES = frozenset({
    "float32", "bfloat16", "float16",
    "int8", "uint8", "int16", "uint16", "int32", "uint32",
})
_WIDTH_CANDIDATES = (16384, 8192, 4096, 2048, 1024, 512, 256, 128)


def _normalize_kernel(params_ref, x_ref, o_ref):
    # params_ref: SMEM (2,) f32 = [mean, denom] with denom = max(sqrt(var), eps)
    # x_ref: (tile_rows, width) tile in the input's native dtype
    # o_ref: (tile_rows, width) f32 tile
    mean = params_ref[0]
    denom = params_ref[1]
    o_ref[...] = (x_ref[...].astype(jnp.float32) - mean) / denom


def _pick_width(total):
    """Widest lane-aligned slab width dividing `total` (total % 128 == 0)."""
    for w in _WIDTH_CANDIDATES:
        if total % w == 0:
            return w
    return None


def _choose_tile_rows(rows, width, align):
    """Near-divisor tile height: ~_TARGET_BLOCK_ELEMS per block, align-multiple."""
    target_rows = max(align, (_TARGET_BLOCK_ELEMS // width) // align * align)
    if rows <= target_rows:
        return rows                       # single full-height block (== array dim)
    nblocks = -(-rows // target_rows)
    tile_rows = -(-rows // nblocks)       # near-equal split -> last block ~full
    tile_rows = -(-tile_rows // align) * align
    return tile_rows


def _run_slab(flat, params, align):
    """Run the normalize kernel over a 128-aligned flat array; returns flat f32."""
    total = flat.size
    width = _pick_width(total)            # always found: total % 128 == 0 here
    rows = total // width
    slab = flat.reshape(rows, width)      # free view: no extra HBM traffic
    tile_rows = _choose_tile_rows(rows, width, align)
    grid = (pl.cdiv(rows, tile_rows),)

    out_slab = pl.pallas_call(
        _normalize_kernel,
        out_shape=jax.ShapeDtypeStruct((rows, width), jnp.float32),
        grid_spec=pltpu.PrefetchScalarGridSpec(
            num_scalar_prefetch=0,
            grid=grid,
            in_specs=[
                pl.BlockSpec(memory_space=pltpu.SMEM),                # [mean, denom]
                pl.BlockSpec((tile_rows, width), lambda i: (i, 0)),   # input tile
            ],
            out_specs=pl.BlockSpec((tile_rows, width), lambda i: (i, 0)),
        ),
        compiler_params=pltpu.CompilerParams(
            dimension_semantics=("parallel",),
            vmem_limit_bytes=_VMEM_LIMIT_BYTES,
        ),
    )(params, slab)
    return out_slab.reshape(-1)


def normalize(x: jax.Array, mean, variance, dimension: int = 1) -> jax.Array:
    """Pallas implementation of NormalizationLayer.forward."""
    mean = jnp.asarray(mean, jnp.float32)
    variance = jnp.asarray(variance, jnp.float32)
    if mean.size != 1 or variance.size != 1:
        raise ValueError("NormalizationLayer expects scalar mean/variance")
    mean = mean.reshape(())
    variance = variance.reshape(())
    denom = jnp.maximum(jnp.sqrt(variance), jnp.float32(F32_EPS))

    total = x.size
    if total % dimension != 0:
        raise ValueError("input size must be divisible by `dimension`")
    out_shape = (total // dimension, dimension)

    # Tiny-input fast path: launch overhead dominates a mem-bound op.
    if total < _TINY_INPUT_ELEMS:
        return (x.astype(jnp.float32).reshape(out_shape) - mean) / denom

    # Stream packed dtypes natively (cast happens inside the kernel); only
    # exotic dtypes get a wrapper cast.
    if jnp.dtype(x.dtype).name not in _NATIVE_DTYPES:
        x = x.astype(jnp.float32)
    itemsize = jnp.dtype(x.dtype).itemsize
    align = max(8, 32 // itemsize)        # sublane tile: f32->8, bf16->16, int8->32

    flat = x.reshape(-1)
    params = jnp.stack([mean, denom])     # (2,) f32 scalars -> SMEM

    rem = total % LANE
    head_total = total - rem
    if rem:
        # Kernel handles the 128-aligned prefix; the <128-element tail is
        # essentially free in plain XLA.  No jnp.pad, no output slice.
        y_head = _run_slab(flat[:head_total], params, align)
        tail = flat[head_total:].astype(jnp.float32)
        y = jnp.concatenate([y_head, (tail - mean) / denom])
    else:
        y = _run_slab(flat, params, align)

    return y.reshape(out_shape)


class NormalizationLayer:
    """Thin wrapper mirroring the PyTorch module's interface."""

    EPS = F32_EPS

    def __init__(self, mean: float, variance: float, dimension: int = 1):
        self.mean = jnp.asarray(mean, jnp.float32)
        self.variance = jnp.asarray(variance, jnp.float32)
        self.dimension = dimension

    def __call__(self, x: jax.Array) -> jax.Array:
        return normalize(x, self.mean, self.variance, self.dimension)

    def output_dim(self):
        return self.dimension


if __name__ == "__main__":
    key = jax.random.PRNGKey(0)
    k1, k2, k3 = jax.random.split(key, 3)

    def _ref(x, mean, variance, dimension):
        xf = x.astype(jnp.float32).reshape(-1, dimension)
        return (xf - mean) / jnp.maximum(jnp.sqrt(variance), jnp.float32(F32_EPS))

    # 1) f32 NCHW-style tensor, dimension=1: 2048 elements -> Pallas path,
    #    lane-dense (1, 2048) slab, single aligned block.
    x = jax.random.uniform(k1, (2, 4, 16, 16), dtype=jnp.float32,
                           minval=-5.0, maxval=5.0)
    layer = NormalizationLayer(mean=2.5, variance=4.0, dimension=1)
    y = jax.block_until_ready(layer(x))
    ref = _ref(x, layer.mean, layer.variance, layer.dimension)
    assert y.shape == ref.shape, (y.shape, ref.shape)
    assert jnp.allclose(y, ref, atol=1e-5, rtol=1e-5), "mismatch (f32 main)"

    # 2) bf16 input, dimension=4: exercises the in-kernel cast path
    #    (input streamed as bf16, cast to f32 inside the kernel).
    xb = jax.random.normal(k2, (2, 4, 16, 16), dtype=jnp.float32).astype(jnp.bfloat16)
    layer_b = NormalizationLayer(mean=0.5, variance=9.0, dimension=4)
    yb = jax.block_until_ready(layer_b(xb))
    refb = _ref(xb, layer_b.mean, layer_b.variance, layer_b.dimension)
    assert yb.shape == refb.shape, (yb.shape, refb.shape)
    assert jnp.allclose(yb, refb, atol=1e-5, rtol=1e-5), "mismatch (bf16 cast)"

    # 3) 595 elements (not a multiple of 128), dimension=7: exercises the
    #    aligned-head kernel + tiny XLA tail (no pad / no output slice).
    x2 = jax.random.normal(k3, (5, 17, 7), dtype=jnp.float32)
    layer2 = NormalizationLayer(mean=-0.5, variance=0.25, dimension=7)
    y2 = jax.block_until_ready(layer2(x2))
    ref2 = _ref(x2, layer2.mean, layer2.variance, layer2.dimension)
    assert y2.shape == ref2.shape, (y2.shape, ref2.shape)
    assert jnp.allclose(y2, ref2, atol=1e-5, rtol=1e-5), "mismatch (tail path)"

    print("KERNEL_OK")
</pallas_src>

<mosaic_0001>
module attributes {stable_mosaic.version = 11 : i64} {
  func.func @_normalize_kernel(%arg0: i32, %arg1: memref<2xf32, #tpu.memory_space<smem>>, %arg2: memref<1x2048xf32, #tpu.memory_space<vmem>>, %arg3: memref<1x2048xf32, #tpu.memory_space<vmem>>) attributes {dimension_semantics = [#tpu.dimension_semantics<parallel>], iteration_bounds = array<i64: 1>, scalar_prefetch = 0 : i64, scratch_operands = 0 : i64, tpu.core_type = #tpu.core_type<tc>, window_params = [{transform_indices = @transform_0, window_bounds = array<i64: 2>}, {transform_indices = @transform_1, window_bounds = array<i64: 1, 2048>}, {transform_indices = @transform_2, window_bounds = array<i64: 1, 2048>}]} {
    %c0 = arith.constant 0 : index
    %0 = memref.load %arg1[%c0] : memref<2xf32, #tpu.memory_space<smem>>
    %c1 = arith.constant 1 : index
    %1 = memref.load %arg1[%c1] : memref<2xf32, #tpu.memory_space<smem>>
    %c0_0 = arith.constant 0 : index
    %c0_1 = arith.constant 0 : index
    %2 = vector.load %arg2[%c0_0, %c0_1] : memref<1x2048xf32, #tpu.memory_space<vmem>>, vector<1x2048xf32>
    %3 = vector.broadcast %0 : f32 to vector<1x2048xf32>
    %4 = arith.subf %2, %3 : vector<1x2048xf32>
    %5 = vector.broadcast %1 : f32 to vector<1x2048xf32>
    %6 = arith.divf %4, %5 : vector<1x2048xf32>
    %c0_2 = arith.constant 0 : index
    %c0_3 = arith.constant 0 : index
    %7 = vector.load %arg3[%c0_2, %c0_3] : memref<1x2048xf32, #tpu.memory_space<vmem>>, vector<1x2048xf32>
    tpu.vector_store %arg3[%c0_2, %c0_3], %6 {strides = array<i32>} : memref<1x2048xf32, #tpu.memory_space<vmem>>, vector<1x2048xf32>,
    return
  }
  func.func @transform_0(%arg0: i32) -> i32 {
    %c0_i32 = arith.constant 0 : i32
    %c0_i32_0 = arith.constant 0 : i32
    return %c0_i32 : i32
  }
  func.func @transform_1(%arg0: i32) -> (i32, i32) {
    %c0_i32 = arith.constant 0 : i32
    %c0_i32_0 = arith.constant 0 : i32
    return %arg0, %c0_i32 : i32, i32
  }
  func.func @transform_2(%arg0: i32) -> (i32, i32) {
    %c0_i32 = arith.constant 0 : i32
    %c0_i32_0 = arith.constant 0 : i32
    return %arg0, %c0_i32 : i32, i32
  }
}

</mosaic_0001>

<bundles_post_ra>
// kernel: tpu_custom_call.1
= control target key start
LH: loop header
LB: loop body
LE: loop exit
PB: predicated region body
PF: predicated region fallthrough
CT: control target
= control target key end

     0   :  { %7 = vsyncpa [#allocation5], 0  ;;  %s151_s0 = inlined_call_operand.hbm [shape: f32[2], index: 0, kind: input, shape index: {}]   ;;  %s152_s1 = inlined_call_operand.hbm [shape: f32[1,2048], index: 1, kind: input, shape index: {}]   ;;  %s153_s2 = inlined_call_operand.hbm [shape: f32[1,2048], index: 2, kind: output, shape index: {}]  }
   0x1   :  { %8 = vsyncpa [#allocation3], 0 }
   0x2   :  { %9 = vsyncpa [#allocation4], 0  ;;  %s124_s9 = smov [#allocation2]   ;;  %s125_s12 = smov [#allocation6]  }
   0x3   :  { %17 = dma.hbm_to_smem %s151_s0, 16, %s124_s9, [#allocation5]  }
   0x4   :  { %s24_s13 = sshll.u32 %s125_s12, 4  ;;  %s25_s13 = int_to_ptr.vmem [resolvable:$true] %s24_s13 }
   0x5   :  { %s86_s14 = scalar_lea.vmem %s25_s13, 256  ;;  %p91_p1 = scmp.lt.s32.totalorder %s25_s13, %s25_s13 }
   0x6   :  { %p87_p0 = scmp.ne.s32.totalorder %s25_s13, %s86_s14  ;;  %p92_p2 = scmp.lt.s32.totalorder %s86_s14, %s86_s14 }
   0x8   :  { %p93_p3 = por %p92_p2, %p91_p1 }
   0xa   :  { %p94_p4 = pnand %p93_p3, %p87_p0 }
   0xc   :  { %97 = shalt.err (!%p94_p4)
}
   0xd   :  { %27 = dma.hbm_to_vmem [thread:$0]  %s152_s1, 256, %s25_s13, [#allocation3]  }
   0xe   :  { %118 = dma.done.wait [#allocation5], 16  }
   0xf   :  { %119 = vsyncadd [#allocation5], 4294967280 }
  0x10   :  { %120 = dma.done.wait [#allocation3], 256  }
  0x11   :  { %121 = vsyncadd [#allocation3], 4294967040 }
  0x12   :  { %34 = sfence }
  0x13   :  { %s64_s0 = sld [smem:[#allocation2 + $0x1]]  ;;  %v37_v1 = vld [vmem:[#allocation6] sm:$0xff]  ;;  %v38_v3 = vld [vmem:[#allocation6 + $0x8] sm:$0xff]  ;;  %s126_s18 = smov [#allocation7]  }
  0x14   :  { %s35_s17 = sld [smem:[#allocation2]]  ;;  %s54_s19 = sshll.u32 %s126_s18, 4  ;;  %s55_s19 = int_to_ptr.vmem [resolvable:$true] %s54_s19 }
  0x15   :  { %s98_s1 = scalar_lea.vmem %s55_s19, 256  ;;  %p103_p6 = scmp.lt.s32.totalorder %s55_s19, %s55_s19 }
  0x16   :  { %p99_p5 = scmp.ne.s32.totalorder %s55_s19, %s98_s1  ;;  %p104_p7 = scmp.lt.s32.totalorder %s98_s1, %s98_s1 }
  0x18   :  { %p105_p8 = por %p104_p7, %p103_p6 }
  0x19   :  { %v42_v0 = vstv %s64_s0 }
  0x1a   :  { %68 = vrcp.f32 %v42_v0  ;;  %v39_v2 = vstv %s35_s17  ;;  %p106_p9 = pnand %p105_p8, %p99_p5 }
  0x1b   :  { %v40_v4 = vsub.f32 %v37_v1, %v39_v2  ;;  %v41_v5 = vsub.f32 %v38_v3, %v39_v2 }
  0x27   :  { %v69_v6 = vpop.eup %68 }
  0x28   :  { %v44_v7 = vmul.f32 %v69_v6, %v40_v4  ;;  %v45_v8 = vmul.f32 %v69_v6, %v41_v5 }
  0x2a   :  { %46 = vst [vmem:[#allocation7] sm:$0xff] %v44_v7  ;;  %47 = vst [vmem:[#allocation7 + $0x8] sm:$0xff] %v45_v8 }
  0x2b   :  { %109 = shalt.err (!%p106_p9)
}
  0x2c   :  { %57 = dma.vmem_to_hbm [thread:$0]  %s55_s19, 256, %s153_s2, [#allocation4]  }
  0x2d   :  { %122 = dma.done.wait [#allocation4], 256  }
  0x2e   :  { %123 = vsyncadd [#allocation4], 4294967040 }
  0x2f   :  { %61 = vsyncpa [#allocation3], 1 }
  0x30   :  { %62 = vsyncpa [#allocation4], 1 }
  0x31   :  { %63 = vsyncpa [#allocation5], 1 }

</bundles_post_ra>
